<compile_context>
chip_gen: v7x
topology: tpu7x:2x2x1
jax: 0.10.0
libtpu: 0.0.40
codegen_flags: <defaults>
</compile_context>

<pallas_src>
import functools

import jax
import jax.numpy as jnp
from jax.experimental import pallas as pl
from jax.experimental.pallas import tpu as pltpu


def _smooth_kernel(x_ref, o_ref, *, h: int, w: int):
    """3x3 binomial blur (replication pad) on a (TC, H*W) block.

    Each block row is one flattened (H, W) channel image. Neighbor accesses are
    static shifts along the flat axis (1 for horizontal, W for vertical); iota
    masks replicate the edges and undo the wrap-around of the shift (including
    any cross-row wrap inside the flattened axis).
    """
    n = h * w
    x = x_ref[...].astype(jnp.float32)            # (TC, H*W)

    col = jax.lax.broadcasted_iota(jnp.int32, x.shape, dimension=1)  # flat pos
    j = col % w                                   # within-row (W) position

    # Horizontal pass: out = x[j-1] + 2*x[j] + x[j+1] with edge replication.
    left = jnp.roll(x, 1, axis=1)                 # x at flat f-1 (wraps)
    left = jnp.where(j == 0, x, left)             # replicate left edge
    right = jnp.roll(x, -1, axis=1)               # x at flat f+1 (wraps)
    right = jnp.where(j == w - 1, x, right)       # replicate right edge
    row = left + 2.0 * x + right

    # Vertical pass: up/down neighbors are +/-W away along the flat axis.
    up = jnp.roll(row, w, axis=1)                 # row at flat f-W (wraps)
    up = jnp.where(col < w, row, up)              # replicate top edge
    down = jnp.roll(row, -w, axis=1)              # row at flat f+W (wraps)
    down = jnp.where(col >= n - w, row, down)     # replicate bottom edge
    out = (up + 2.0 * row + down) * (1.0 / 16.0)

    o_ref[...] = out.astype(o_ref.dtype)


def _pick_block_rows(bc: int, row_bytes: int, target_bytes: int = 2 << 20) -> int:
    """Channels per block: ~target_bytes per buffer (safe for v5e/v6e/v7x VMEM
    with double-buffered in+out plus temps), sublane-aligned (multiple of 8)
    when tiling, and >= 2 grid steps when there is enough work so the parallel
    grid axis can be split across TensorCores."""
    max_rows = max(1, target_bytes // max(1, row_bytes))
    if bc <= 8:
        return bc                        # tiny problem: single full-extent block
    tc = min(max_rows, bc // 2)          # keep at least 2 grid steps
    tc = max(8, (tc // 8) * 8)           # sublane-tile aligned block rows
    return min(tc, bc)


def smooth(x: jax.Array) -> jax.Array:
    """Blurs each channel of an NCHW tensor (Smooth.forward equivalent)."""
    b, c, h, w = x.shape
    bc = b * c
    n = h * w
    itemsize = x.dtype.itemsize

    # Flatten each channel image to a lane-dense row (no data movement).
    xr = x.reshape(bc, n)

    # TODO(synk): for single channels too large for VMEM (H*W*itemsize of tens
    # of MiB), add an H-tiled grid axis with a 1-row halo instead of keeping
    # the whole channel resident.
    tc = _pick_block_rows(bc, n * itemsize)
    grid = (pl.cdiv(bc, tc),)

    cost = pl.CostEstimate(
        flops=9 * bc * n,                       # ~9 VALU ops per output element
        transcendentals=0,
        bytes_accessed=2 * bc * n * itemsize,   # read + write, bandwidth-bound
    )

    out = pl.pallas_call(
        functools.partial(_smooth_kernel, h=h, w=w),
        out_shape=jax.ShapeDtypeStruct((bc, n), x.dtype),
        grid=grid,
        in_specs=[pl.BlockSpec((tc, n), lambda i: (i, 0))],
        out_specs=pl.BlockSpec((tc, n), lambda i: (i, 0)),
        compiler_params=pltpu.CompilerParams(
            dimension_semantics=("parallel",),
            vmem_limit_bytes=32 * 1024 * 1024,
        ),
        cost_estimate=cost,
    )(xr)

    return out.reshape(b, c, h, w)


def _smooth_reference(x: jax.Array) -> jax.Array:
    """Pure-JAX reference: ReplicationPad2d(1) + conv2d with the fixed kernel."""
    b, c, h, w = x.shape
    k = jnp.array([[1.0, 2.0, 1.0], [2.0, 4.0, 2.0], [1.0, 2.0, 1.0]], jnp.float32)
    k = k / k.sum()
    xp = jnp.pad(x, ((0, 0), (0, 0), (1, 1), (1, 1)), mode="edge")
    out = jnp.zeros_like(x)
    for di in range(3):
        for dj in range(3):
            out = out + k[di, dj] * xp[:, :, di:di + h, dj:dj + w]
    return out


if __name__ == "__main__":
    key = jax.random.PRNGKey(0)
    x = jax.random.normal(key, (2, 4, 16, 16), dtype=jnp.float32)

    y = smooth(x)
    jax.block_until_ready(y)

    y_ref = _smooth_reference(x)
    assert y.shape == x.shape and y.dtype == x.dtype
    assert jnp.max(jnp.abs(y - y_ref)) < 1e-5

    print("KERNEL_OK")
</pallas_src>

<mosaic_0001>
module attributes {stable_mosaic.version = 11 : i64} {
  func.func @_smooth_kernel(%arg0: i32, %arg1: memref<8x256xf32, #tpu.memory_space<vmem>>, %arg2: memref<8x256xf32, #tpu.memory_space<vmem>>) attributes {dimension_semantics = [#tpu.dimension_semantics<parallel>], iteration_bounds = array<i64: 1>, scalar_prefetch = 0 : i64, scratch_operands = 0 : i64, tpu.core_type = #tpu.core_type<tc>, window_params = [{transform_indices = @transform_0, window_bounds = array<i64: 8, 256>}, {transform_indices = @transform_1, window_bounds = array<i64: 8, 256>}]} {
    %c0 = arith.constant 0 : index
    %c0_0 = arith.constant 0 : index
    %0 = vector.load %arg1[%c0, %c0_0] : memref<8x256xf32, #tpu.memory_space<vmem>>, vector<8x256xf32>
    %1 = tpu.iota {dimensions = array<i32: 1>} : vector<8x256xi32>
    %c16_i32 = arith.constant 16 : i32
    %c0_i32 = arith.constant 0 : i32
    %2 = arith.cmpi eq, %c16_i32, %c0_i32 : i32
    %c1_i32 = arith.constant 1 : i32
    %3 = arith.select %2, %c1_i32, %c16_i32 : i32
    %4 = vector.broadcast %3 : i32 to vector<8x256xi32>
    %5 = arith.remsi %1, %4 : vector<8x256xi32>
    %c0_i32_1 = arith.constant 0 : i32
    %6 = vector.broadcast %c0_i32_1 : i32 to vector<8x256xi32>
    %7 = arith.cmpi ne, %5, %6 : vector<8x256xi32>
    %c0_i32_2 = arith.constant 0 : i32
    %8 = vector.broadcast %c0_i32_2 : i32 to vector<8x256xi32>
    %9 = arith.cmpi slt, %5, %8 : vector<8x256xi32>
    %c0_i32_3 = arith.constant 0 : i32
    %10 = arith.cmpi slt, %3, %c0_i32_3 : i32
    %11 = vector.broadcast %10 : i1 to vector<8x256xi1>
    %12 = vector.broadcast %11 : vector<8x256xi1> to vector<8x256xi1>
    %13 = arith.xori %9, %12 : vector<8x256xi1>
    %14 = arith.andi %13, %7 : vector<8x256xi1>
    %15 = vector.broadcast %3 : i32 to vector<8x256xi32>
    %16 = arith.addi %5, %15 : vector<8x256xi32>
    %17 = arith.select %14, %16, %5 : vector<8x256xi1>, vector<8x256xi32>
    %18 = vector.extract_strided_slice %0 {offsets = [0, 255], sizes = [8, 1], strides = [1, 1]} : vector<8x256xf32> to vector<8x1xf32>
    %19 = vector.extract_strided_slice %0 {offsets = [0, 0], sizes = [8, 255], strides = [1, 1]} : vector<8x256xf32> to vector<8x255xf32>
    %20 = tpu.concatenate %18, %19 in 1 : vector<8x1xf32>, vector<8x255xf32> -> vector<8x256xf32>
    %c0_i32_4 = arith.constant 0 : i32
    %21 = vector.broadcast %c0_i32_4 : i32 to vector<8x256xi32>
    %22 = arith.cmpi eq, %17, %21 : vector<8x256xi32>
    %23 = arith.select %22, %0, %20 : vector<8x256xi1>, vector<8x256xf32>
    %24 = vector.extract_strided_slice %0 {offsets = [0, 1], sizes = [8, 255], strides = [1, 1]} : vector<8x256xf32> to vector<8x255xf32>
    %25 = vector.extract_strided_slice %0 {offsets = [0, 0], sizes = [8, 1], strides = [1, 1]} : vector<8x256xf32> to vector<8x1xf32>
    %26 = tpu.concatenate %24, %25 in 1 : vector<8x255xf32>, vector<8x1xf32> -> vector<8x256xf32>
    %c15_i32 = arith.constant 15 : i32
    %27 = vector.broadcast %c15_i32 : i32 to vector<8x256xi32>
    %28 = arith.cmpi eq, %17, %27 : vector<8x256xi32>
    %29 = arith.select %28, %0, %26 : vector<8x256xi1>, vector<8x256xf32>
    %cst = arith.constant 2.000000e+00 : f32
    %30 = vector.broadcast %cst : f32 to vector<8x256xf32>
    %31 = arith.mulf %30, %0 : vector<8x256xf32>
    %32 = arith.addf %23, %31 : vector<8x256xf32>
    %33 = arith.addf %32, %29 : vector<8x256xf32>
    %34 = vector.extract_strided_slice %33 {offsets = [0, 240], sizes = [8, 16], strides = [1, 1]} : vector<8x256xf32> to vector<8x16xf32>
    %35 = vector.extract_strided_slice %33 {offsets = [0, 0], sizes = [8, 240], strides = [1, 1]} : vector<8x256xf32> to vector<8x240xf32>
    %36 = tpu.concatenate %34, %35 in 1 : vector<8x16xf32>, vector<8x240xf32> -> vector<8x256xf32>
    %c16_i32_5 = arith.constant 16 : i32
    %37 = vector.broadcast %c16_i32_5 : i32 to vector<8x256xi32>
    %38 = arith.cmpi slt, %1, %37 : vector<8x256xi32>
    %39 = arith.select %38, %33, %36 : vector<8x256xi1>, vector<8x256xf32>
    %40 = vector.extract_strided_slice %33 {offsets = [0, 16], sizes = [8, 240], strides = [1, 1]} : vector<8x256xf32> to vector<8x240xf32>
    %41 = vector.extract_strided_slice %33 {offsets = [0, 0], sizes = [8, 16], strides = [1, 1]} : vector<8x256xf32> to vector<8x16xf32>
    %42 = tpu.concatenate %40, %41 in 1 : vector<8x240xf32>, vector<8x16xf32> -> vector<8x256xf32>
    %c240_i32 = arith.constant 240 : i32
    %43 = vector.broadcast %c240_i32 : i32 to vector<8x256xi32>
    %44 = arith.cmpi sge, %1, %43 : vector<8x256xi32>
    %45 = arith.select %44, %33, %42 : vector<8x256xi1>, vector<8x256xf32>
    %cst_6 = arith.constant 2.000000e+00 : f32
    %46 = vector.broadcast %cst_6 : f32 to vector<8x256xf32>
    %47 = arith.mulf %46, %33 : vector<8x256xf32>
    %48 = arith.addf %39, %47 : vector<8x256xf32>
    %49 = arith.addf %48, %45 : vector<8x256xf32>
    %cst_7 = arith.constant 6.250000e-02 : f32
    %50 = vector.broadcast %cst_7 : f32 to vector<8x256xf32>
    %51 = arith.mulf %49, %50 : vector<8x256xf32>
    %c0_8 = arith.constant 0 : index
    %c0_9 = arith.constant 0 : index
    %52 = vector.load %arg2[%c0_8, %c0_9] : memref<8x256xf32, #tpu.memory_space<vmem>>, vector<8x256xf32>
    tpu.vector_store %arg2[%c0_8, %c0_9], %51 {strides = array<i32>} : memref<8x256xf32, #tpu.memory_space<vmem>>, vector<8x256xf32>,
    return
  }
  func.func @transform_0(%arg0: i32) -> (i32, i32) {
    %c0_i32 = arith.constant 0 : i32
    %c0_i32_0 = arith.constant 0 : i32
    return %arg0, %c0_i32 : i32, i32
  }
  func.func @transform_1(%arg0: i32) -> (i32, i32) {
    %c0_i32 = arith.constant 0 : i32
    %c0_i32_0 = arith.constant 0 : i32
    return %arg0, %c0_i32 : i32, i32
  }
}

</mosaic_0001>

<bundles_post_ra>
// kernel: tpu_custom_call.1
= control target key start
LH: loop header
LB: loop body
LE: loop exit
PB: predicated region body
PF: predicated region fallthrough
CT: control target
= control target key end

     0   :  { %6 = vsyncpa [#allocation3], 0  ;;  %s235_s0 = inlined_call_operand.hbm [shape: f32[8,256], index: 0, kind: input, shape index: {}]   ;;  %s236_s1 = inlined_call_operand.hbm [shape: f32[8,256], index: 1, kind: output, shape index: {}]  }
   0x1   :  { %7 = vsyncpa [#allocation4], 0  ;;  %s195_s6 = smov [#allocation2]   ;;  %s147_s10 = scalar_lea.hbm %s235_s0, 256 }
   0x2   :  { %s14_s7 = sshll.u32 %s195_s6, 4  ;;  %p148_p0 = scmp.ne.s32.totalorder %s235_s0, %s147_s10  ;;  %s15_s7 = int_to_ptr.vmem [resolvable:$true] %s14_s7 }
   0x3   :  { %p151_p1 = scmp.lt.u32.totalorder %s147_s10, %s235_s0 }
   0x5   :  { %p153_p2 = pnand %p151_p1, %p148_p0 }
   0x7   :  { %156 = shalt.err (!%p153_p2)
}
   0x8   :  { %s157_s15 = scalar_lea.vmem %s15_s7, 256  ;;  %p162_p4 = scmp.lt.s32.totalorder %s15_s7, %s15_s7 }
   0x9   :  { %p158_p3 = scmp.ne.s32.totalorder %s15_s7, %s157_s15  ;;  %p163_p5 = scmp.lt.s32.totalorder %s157_s15, %s157_s15 }
   0xb   :  { %p164_p6 = por %p163_p5, %p162_p4 }
   0xd   :  { %p165_p7 = pnand %p164_p6, %p158_p3 }
   0xf   :  { %168 = shalt.err (!%p165_p7)
}
  0x10   :  { %17 = dma.hbm_to_vmem [thread:$0]  %s235_s0, 256, %s15_s7, [#allocation3]  }
  0x11   :  { %191 = dma.done.wait [#allocation3], 256  }
  0x12   :  { %192 = vsyncadd [#allocation3], 4294967040  ;;  %v22_v0 = vld [vmem:[#allocation2 + $0x8] sm:$0xff]  ;;  %v21_v1 = vld [vmem:[#allocation2] sm:$0xff]  ;;  %s196_s18 = smov 1   ;;  %s197_s19 = smov 127   ;;  %v23_v2 = vlaneseq }
  0x13   :  { %51 = vrot.lane.b32.xlu0 %v22_v0, %s196_s18  ;;  %66 = vrot.lane.b32.xlu1 %v21_v1, %s197_s19  ;;  %vm70_vm0 = vcmask 1039360   ;;  %vm57_vm1 = vcmask 7168   ;;  %v81_v9 = vmul.f32 2.0, %v22_v0  ;;  %v80_v10 = vmul.f32 2.0, %v21_v1  ;;  %s198_s0 = smov 16   ;;  %s199_s20 = smov 112  }
  0x14   :  { %v24_v3 = vand.u32 127, %v23_v2  ;;  %vm93_vm6 = vcmask 130048   ;;  %vm106_vm8 = vcmask 916480   ;;  %s200_s21 = smov [#allocation5]  }
  0x15   :  { %s132_s22 = sshll.u32 %s200_s21, 4  ;;  %s133_s22 = int_to_ptr.vmem [resolvable:$true] %s132_s22 }
  0x16   :  { %v25_v4 = vadd.s32 128, %v24_v3  ;;  %v30_v5 = vand.u32 15, %v24_v3  ;;  %vm98_vm7 = vcmp.lt.s32.totalorder %v24_v3, 16  ;;  %s169_s23 = scalar_lea.vmem %s133_s22, 256  ;;  %p174_p9 = scmp.lt.s32.totalorder %s133_s22, %s133_s22 }
  0x17   :  { %68 = vrot.lane.b32.xlu1 %v22_v0, %s197_s19  ;;  %55 = vrot.lane.b32.xlu0 %v21_v1, %s196_s18  ;;  %p170_p8 = scmp.ne.s32.totalorder %s133_s22, %s169_s23  ;;  %p175_p10 = scmp.lt.s32.totalorder %s169_s23, %s169_s23 }
  0x18   :  { %v37_v6 = vand.u32 15, %v25_v4  ;;  %vm62_vm2 = vcmp.eq.s32.totalorder %v30_v5, 0  ;;  %vm76_vm4 = vcmp.eq.s32.totalorder %v30_v5, 15  ;;  %vm113_vm9 = vcmp.ge.s32.totalorder %v25_v4, 240 }
  0x19   :  { %p176_p11 = por %p175_p10, %p174_p9 }
  0x1a   :  { %vm63_vm3 = vcmp.eq.s32.totalorder %v37_v6, 0  ;;  %vm77_vm5 = vcmp.eq.s32.totalorder %v37_v6, 15 }
  0x1b   :  { %p177_p12 = pnand %p176_p11, %p170_p8 }
  0x85   :  { %v52_v7 = vpop.permute.xlu0 %51  ;;  %v67_v8 = vpop.permute.xlu1 %66 }
  0x89   :  { %v69_v11 = vpop.permute.xlu1 %68  ;;  %v56_v12 = vpop.permute.xlu0 %55 }
  0x8a   :  { %v71_v13 = vsel %vm70_vm0, %v67_v8, %v69_v11  ;;  %v75_v14 = vsel %vm70_vm0, %v69_v11, %v67_v8  ;;  %v58_v15 = vsel %vm57_vm1, %v56_v12, %v52_v7  ;;  %v61_v16 = vsel %vm57_vm1, %v52_v7, %v56_v12 }
  0x8b   :  { %v64_v17 = vsel %vm62_vm2, %v21_v1, %v61_v16  ;;  %v65_v18 = vsel %vm63_vm3, %v22_v0, %v58_v15  ;;  %v78_v21 = vsel %vm76_vm4, %v21_v1, %v71_v13  ;;  %v79_v22 = vsel %vm77_vm5, %v22_v0, %v75_v14 }
  0x8c   :  { %v82_v19 = vadd.f32 %v80_v10, %v64_v17  ;;  %v83_v20 = vadd.f32 %v81_v9, %v65_v18 }
  0x8e   :  { %v84_v23 = vadd.f32 %v82_v19, %v78_v21  ;;  %v85_v24 = vadd.f32 %v83_v20, %v79_v22 }
  0x90   :  { %87 = vrot.lane.b32.xlu0 %v85_v24, %s198_s0  ;;  %91 = vrot.lane.b32.xlu1 %v84_v23, %s198_s0  ;;  %v116_v28 = vmul.f32 2.0, %v84_v23  ;;  %v117_v31 = vmul.f32 2.0, %v85_v24 }
  0x94   :  { %102 = vrot.lane.b32.xlu0 %v84_v23, %s199_s20  ;;  %104 = vrot.lane.b32.xlu1 %v85_v24, %s199_s20 }
 0x102   :  { %v88_v25 = vpop.permute.xlu0 %87  ;;  %v92_v26 = vpop.permute.xlu1 %91 }
 0x103   :  { %v97_v27 = vsel %vm93_vm6, %v88_v25, %v92_v26  ;;  %v94_v29 = vsel %vm93_vm6, %v92_v26, %v88_v25 }
 0x104   :  { %v100_v30 = vsel %vm98_vm7, %v84_v23, %v97_v27  ;;  %v119_v35 = vadd.f32 %v117_v31, %v94_v29 }
 0x105   :  { %v118_v32 = vadd.f32 %v116_v28, %v100_v30 }
 0x106   :  { %v103_v33 = vpop.permute.xlu0 %102  ;;  %v105_v34 = vpop.permute.xlu1 %104 }
 0x107   :  { %v107_v36 = vsel %vm106_vm8, %v103_v33, %v105_v34  ;;  %v111_v37 = vsel %vm106_vm8, %v105_v34, %v103_v33 }
 0x108   :  { %v115_v38 = vsel %vm113_vm9, %v85_v24, %v111_v37  ;;  %v120_v39 = vadd.f32 %v118_v32, %v107_v36 }
 0x109   :  { %v121_v40 = vadd.f32 %v119_v35, %v115_v38 }
 0x10a   :  { %v122_v41 = vmul.f32 0.0625, %v120_v39 }
 0x10b   :  { %v123_v42 = vmul.f32 0.0625, %v121_v40 }
 0x10c   :  { %124 = vst [vmem:[#allocation5] sm:$0xff] %v122_v41 }
 0x10d   :  { %125 = vst [vmem:[#allocation5 + $0x8] sm:$0xff] %v123_v42 }
 0x10e   :  { %180 = shalt.err (!%p177_p12)
}
 0x10f   :  { %s181_s26 = scalar_lea.hbm %s236_s1, 256 }
 0x110   :  { %p182_p13 = scmp.ne.s32.totalorder %s236_s1, %s181_s26  ;;  %p185_p0 = scmp.lt.u32.totalorder %s181_s26, %s236_s1 }
 0x112   :  { %p187_p1 = pnand %p185_p0, %p182_p13 }
 0x114   :  { %190 = shalt.err (!%p187_p1)
}
 0x115   :  { %135 = dma.vmem_to_hbm [thread:$0]  %s133_s22, 256, %s236_s1, [#allocation4]  }
 0x116   :  { %193 = dma.done.wait [#allocation4], 256  }
 0x117   :  { %194 = vsyncadd [#allocation4], 4294967040 }
 0x118   :  { %139 = vsyncpa [#allocation3], 1 }
 0x119   :  { %140 = vsyncpa [#allocation4], 1 }

</bundles_post_ra>
